<compile_context>
chip_gen: v6e
topology: v6e:2x2x1
jax: 0.10.0
libtpu: 0.0.40
codegen_flags: <defaults>
</compile_context>

<pallas_src>
import jax
import jax.numpy as jnp
from jax import lax
from jax.experimental import pallas as pl
from jax.experimental.pallas import tpu as pltpu


def _round_up(x, m):
    return (x + m - 1) // m * m


def _pick_tile(n, candidates):
    """Largest candidate that divides n, else n (full extent)."""
    for c in candidates:
        if n % c == 0:
            return c
    return n


def _pick_time_chunk(T, max_chunk=16):
    # largest divisor of T that is <= max_chunk (demo T=8 -> whole sequence, grid=(1,))
    for c in range(min(T, max_chunk), 0, -1):
        if T % c == 0:
            return c
    return 1


# ---------------------------------------------------------------------------
# Kernel A: matmul + bias, tiled over rows (M) and output columns (N).
# Used for BOTH hoisted projections:
#   input projection  (T*Bp, E)  @ (E, 4Hp) + bias
#   output projection (T*Bp, Hp) @ (Hp, Vp) + bias   (Vp tiled when large)
# K stays full-extent (E or Hp, both modest), so no K-accumulator is needed.
# ---------------------------------------------------------------------------
def _matmul_bias_kernel(x_ref, w_ref, b_ref, o_ref):
    o_ref[...] = (jnp.dot(x_ref[...], w_ref[...],
                          preferred_element_type=jnp.float32)
                  + b_ref[...])


def _matmul_bias(x, w, b):
    M, K = x.shape
    _, N = w.shape
    tm = _pick_tile(M, (512, 256, 128))
    tn = _pick_tile(N, (1024, 512, 256, 128))
    return pl.pallas_call(
        _matmul_bias_kernel,
        out_shape=jax.ShapeDtypeStruct((M, N), jnp.float32),
        grid_spec=pltpu.PrefetchScalarGridSpec(
            num_scalar_prefetch=0,
            grid=(M // tm, N // tn),
            in_specs=[
                pl.BlockSpec((tm, K), lambda i, j: (i, 0)),   # activation row tile
                pl.BlockSpec((K, tn), lambda i, j: (0, j)),   # weight column tile
                pl.BlockSpec((1, tn), lambda i, j: (0, j)),   # bias column tile
            ],
            out_specs=pl.BlockSpec((tm, tn), lambda i, j: (i, j)),
        ),
        compiler_params=pltpu.CompilerParams(
            dimension_semantics=("parallel", "parallel")),
    )(x, w, b.reshape(1, N))


# ---------------------------------------------------------------------------
# Kernel B: LSTM recurrence over one time chunk.
#   gx_ref  : (TC, Bp, 4Hp)  precomputed x_t @ W_ih^T + (b_ih + b_hh)
#   whh_ref : (Hp, 4Hp)      resident recurrent weight (same block every step ->
#                            no re-DMA across grid iterations)
#   h_out   : (TC, Bp, Hp)   hidden states for this chunk (lane-dense stores)
#   h_ref/c_ref : (Bp, Hp)   VMEM scratch, persists across grid steps
# ---------------------------------------------------------------------------
def _lstm_chunk_kernel(gx_ref, whh_ref, h_out_ref, h_ref, c_ref):
    @pl.when(pl.program_id(0) == 0)
    def _():
        h_ref[...] = jnp.zeros_like(h_ref)
        c_ref[...] = jnp.zeros_like(c_ref)

    whh = whh_ref[...]
    Hp = h_ref.shape[1]
    TC = gx_ref.shape[0]

    def step(t, carry):
        h, c = carry
        # only the recurrent matmul remains on the serial path
        gates = gx_ref[t] + jnp.dot(h, whh, preferred_element_type=jnp.float32)
        # Hp is a multiple of 128 -> each gate slice is lane-aligned (free selection)
        i_g = jax.nn.sigmoid(gates[:, 0 * Hp:1 * Hp])
        f_g = jax.nn.sigmoid(gates[:, 1 * Hp:2 * Hp])
        g_g = jnp.tanh(gates[:, 2 * Hp:3 * Hp])
        o_g = jax.nn.sigmoid(gates[:, 3 * Hp:4 * Hp])
        c_new = f_g * c + i_g * g_g
        h_new = o_g * jnp.tanh(c_new)
        h_out_ref[t] = h_new
        return h_new, c_new

    # short fixed trip-count -> unroll for LLO scheduler visibility
    h, c = lax.fori_loop(0, TC, step, (h_ref[...], c_ref[...]), unroll=True)
    h_ref[...] = h
    c_ref[...] = c


# ---------------------------------------------------------------------------
# Wrapper: PyTorch DecoderRNN.forward semantics (batch_first).
# ---------------------------------------------------------------------------
def decoder_rnn_forward(features, captions, params):
    """features: (B, E) f32; captions: (B, Tc) int32. Returns (B, Tc+1, V) f32."""
    embed_w = params["embed_w"]                       # (V, E)
    w_ih, w_hh = params["w_ih"], params["w_hh"]       # (4H, E), (4H, H)
    b_ih, b_hh = params["b_ih"], params["b_hh"]       # (4H,), (4H,)
    w_fc, b_fc = params["w_fc"], params["b_fc"]       # (V, H), (V,)

    H = w_hh.shape[1]
    V, E = embed_w.shape

    # Glue: embedding gather + concat + layout change (data-dependent gather stays in XLA).
    emb = jnp.take(embed_w, captions, axis=0)                      # (B, Tc, E)
    x = jnp.concatenate([features[:, None, :], emb], axis=1)       # (B, T, E)
    x = jnp.transpose(x, (1, 0, 2)).astype(jnp.float32)            # (T, B, E) time-major
    T, B, _ = x.shape

    # TPU-friendly padding.
    Bp = _round_up(B, 8)        # f32 sublane
    Hp = _round_up(H, 128)      # lane-aligned gate slices
    Vp = _round_up(V, 128)      # lane-dense FC output

    x = jnp.pad(x, ((0, 0), (0, Bp - B), (0, 0)))                  # (T, Bp, E)

    # Per-gate zero padding keeps padded hidden units exactly 0 through the LSTM.
    wih_p = jnp.pad(w_ih.reshape(4, H, E), ((0, 0), (0, Hp - H), (0, 0)))
    wih_t = jnp.transpose(wih_p.reshape(4 * Hp, E)).astype(jnp.float32)            # (E, 4Hp)
    whh_p = jnp.pad(w_hh.reshape(4, H, H), ((0, 0), (0, Hp - H), (0, Hp - H)))
    whh_t = jnp.transpose(whh_p.reshape(4 * Hp, Hp)).astype(jnp.float32)           # (Hp, 4Hp)
    bg = jnp.pad((b_ih + b_hh).reshape(4, H), ((0, 0), (0, Hp - H)))
    bg = bg.reshape(4 * Hp).astype(jnp.float32)                                    # (4Hp,)
    wfc_t = jnp.transpose(
        jnp.pad(w_fc, ((0, Vp - V), (0, Hp - H)))).astype(jnp.float32)             # (Hp, Vp)
    bfc = jnp.pad(b_fc, (0, Vp - V)).astype(jnp.float32)                           # (Vp,)

    # 1) Hoisted input projection: one big MXU matmul for all T*Bp rows.
    gx = _matmul_bias(x.reshape(T * Bp, E), wih_t, bg)             # (T*Bp, 4Hp)
    gx = gx.reshape(T, Bp, 4 * Hp)

    # 2) LSTM recurrence, chunked over time (per-grid-step overhead amortized over TC steps).
    TC = _pick_time_chunk(T)
    h_seq = pl.pallas_call(
        _lstm_chunk_kernel,
        out_shape=jax.ShapeDtypeStruct((T, Bp, Hp), jnp.float32),
        grid_spec=pltpu.PrefetchScalarGridSpec(
            num_scalar_prefetch=0,
            grid=(T // TC,),
            in_specs=[
                pl.BlockSpec((TC, Bp, 4 * Hp), lambda s: (s, 0, 0)),  # precomputed gates_x
                pl.BlockSpec((Hp, 4 * Hp), lambda s: (0, 0)),         # W_hh^T resident
            ],
            out_specs=pl.BlockSpec((TC, Bp, Hp), lambda s: (s, 0, 0)),
            scratch_shapes=[pltpu.VMEM((Bp, Hp), jnp.float32),   # h state
                            pltpu.VMEM((Bp, Hp), jnp.float32)],  # c state
        ),
        compiler_params=pltpu.CompilerParams(
            # Time is a true recurrence (h/c persist in scratch): must stay "arbitrary".
            dimension_semantics=("arbitrary",)),
    )(gx, whh_t)

    # 3) Hoisted output projection: one big MXU matmul, lane-dense output, vocab-tiled.
    logits = _matmul_bias(h_seq.reshape(T * Bp, Hp), wfc_t, bfc)   # (T*Bp, Vp)
    logits = logits.reshape(T, Bp, Vp)[:, :B, :V]

    return jnp.transpose(logits, (1, 0, 2))                        # (B, T, V), batch_first


# ---------------------------------------------------------------------------
# Pure-JAX reference mirroring PyTorch semantics (for correctness check).
# ---------------------------------------------------------------------------
def _reference_forward(features, captions, params):
    emb = jnp.take(params["embed_w"], captions, axis=0)
    x = jnp.concatenate([features[:, None, :], emb], axis=1)       # (B, T, E)
    B = x.shape[0]
    H = params["w_hh"].shape[1]

    def cell(carry, x_t):
        h, c = carry
        gates = (x_t @ params["w_ih"].T + params["b_ih"]
                 + h @ params["w_hh"].T + params["b_hh"])
        i_g, f_g, g_g, o_g = jnp.split(gates, 4, axis=-1)
        c_new = jax.nn.sigmoid(f_g) * c + jax.nn.sigmoid(i_g) * jnp.tanh(g_g)
        h_new = jax.nn.sigmoid(o_g) * jnp.tanh(c_new)
        return (h_new, c_new), h_new

    init = (jnp.zeros((B, H), jnp.float32), jnp.zeros((B, H), jnp.float32))
    _, hs = jax.lax.scan(cell, init, jnp.transpose(x, (1, 0, 2)))  # (T, B, H)
    hs = jnp.transpose(hs, (1, 0, 2))                              # (B, T, H)
    return hs @ params["w_fc"].T + params["b_fc"]


def init_params(key, embed_size, hidden_size, vocab_size):
    ks = jax.random.split(key, 7)
    k = 1.0 / jnp.sqrt(hidden_size)
    u = lambda kk, shape, s: jax.random.uniform(kk, shape, jnp.float32, -s, s)
    return {
        "embed_w": u(ks[0], (vocab_size, embed_size), 0.1),
        "w_ih": u(ks[1], (4 * hidden_size, embed_size), k),
        "w_hh": u(ks[2], (4 * hidden_size, hidden_size), k),
        "b_ih": u(ks[3], (4 * hidden_size,), k),
        "b_hh": u(ks[4], (4 * hidden_size,), k),
        "w_fc": u(ks[5], (vocab_size, hidden_size), k),
        "b_fc": u(ks[6], (vocab_size,), k),
    }


if __name__ == "__main__":
    embed_size, hidden_size, vocab_size = 32, 32, 128
    B, Tc = 2, 7    # features contribute 1 extra timestep -> T = 8

    key = jax.random.PRNGKey(0)
    kp, kf, kc = jax.random.split(key, 3)
    params = init_params(kp, embed_size, hidden_size, vocab_size)
    features = jax.random.normal(kf, (B, embed_size), jnp.float32)
    captions = jax.random.randint(kc, (B, Tc), 0, vocab_size, jnp.int32)

    out = decoder_rnn_forward(features, captions, params)
    out = jax.block_until_ready(out)

    ref = _reference_forward(features, captions, params)
    assert out.shape == (B, Tc + 1, vocab_size)
    assert jnp.allclose(out, ref, atol=2e-4, rtol=2e-4), "mismatch vs reference"

    print("KERNEL_OK")
</pallas_src>

<mosaic_0001>
module attributes {stable_mosaic.version = 11 : i64} {
  func.func @_matmul_bias_kernel(%arg0: i32, %arg1: i32, %arg2: memref<64x32xf32, #tpu.memory_space<vmem>>, %arg3: memref<32x512xf32, #tpu.memory_space<vmem>>, %arg4: memref<1x512xf32, #tpu.memory_space<vmem>>, %arg5: memref<64x512xf32, #tpu.memory_space<vmem>>) attributes {dimension_semantics = [#tpu.dimension_semantics<parallel>, #tpu.dimension_semantics<parallel>], iteration_bounds = array<i64: 1, 1>, scalar_prefetch = 0 : i64, scratch_operands = 0 : i64, tpu.core_type = #tpu.core_type<tc>, window_params = [{transform_indices = @transform_0, window_bounds = array<i64: 64, 32>}, {transform_indices = @transform_1, window_bounds = array<i64: 32, 512>}, {transform_indices = @transform_2, window_bounds = array<i64: 1, 512>}, {transform_indices = @transform_3, window_bounds = array<i64: 64, 512>}]} {
    %c0 = arith.constant 0 : index
    %c0_0 = arith.constant 0 : index
    %0 = vector.load %arg2[%c0, %c0_0] : memref<64x32xf32, #tpu.memory_space<vmem>>, vector<64x32xf32>
    %c0_1 = arith.constant 0 : index
    %c0_2 = arith.constant 0 : index
    %1 = vector.load %arg3[%c0_1, %c0_2] : memref<32x512xf32, #tpu.memory_space<vmem>>, vector<32x512xf32>
    %cst = arith.constant dense<0.000000e+00> : vector<64x512xf32>
    %2 = tpu.matmul %0, %1, %cst {dimension_numbers = #tpu.dot_dimension_numbers<[1], [0], [0], [1], [0, 0, 1, 1], [], []>} : vector<64x32xf32>, vector<32x512xf32>, vector<64x512xf32> -> vector<64x512xf32>
    %c0_3 = arith.constant 0 : index
    %c0_4 = arith.constant 0 : index
    %3 = vector.load %arg4[%c0_3, %c0_4] : memref<1x512xf32, #tpu.memory_space<vmem>>, vector<1x512xf32>
    %4 = vector.broadcast %3 : vector<1x512xf32> to vector<64x512xf32>
    %5 = arith.addf %2, %4 : vector<64x512xf32>
    %c0_5 = arith.constant 0 : index
    %c0_6 = arith.constant 0 : index
    %6 = vector.load %arg5[%c0_5, %c0_6] : memref<64x512xf32, #tpu.memory_space<vmem>>, vector<64x512xf32>
    tpu.vector_store %arg5[%c0_5, %c0_6], %5 {strides = array<i32>} : memref<64x512xf32, #tpu.memory_space<vmem>>, vector<64x512xf32>,
    return
  }
  func.func @transform_0(%arg0: i32, %arg1: i32) -> (i32, i32) {
    %c0_i32 = arith.constant 0 : i32
    %c0_i32_0 = arith.constant 0 : i32
    return %arg0, %c0_i32 : i32, i32
  }
  func.func @transform_1(%arg0: i32, %arg1: i32) -> (i32, i32) {
    %c0_i32 = arith.constant 0 : i32
    %c0_i32_0 = arith.constant 0 : i32
    return %c0_i32, %arg1 : i32, i32
  }
  func.func @transform_2(%arg0: i32, %arg1: i32) -> (i32, i32) {
    %c0_i32 = arith.constant 0 : i32
    %c0_i32_0 = arith.constant 0 : i32
    return %c0_i32, %arg1 : i32, i32
  }
  func.func @transform_3(%arg0: i32, %arg1: i32) -> (i32, i32) {
    %c0_i32 = arith.constant 0 : i32
    return %arg0, %arg1 : i32, i32
  }
}

</mosaic_0001>

<bundles_post_ra>
// kernel: tpu_custom_call.1
= control target key start
LH: loop header
LB: loop body
LE: loop exit
PB: predicated region body
PF: predicated region fallthrough
CT: control target
= control target key end

     0   :  { %8 = vsyncpa [#allocation3], 0  ;;  %s576_s0 = inlined_call_operand.vmem [shape: f32[64,32], index: 0, kind: input, shape index: {}]   ;;  %s577_s1 = inlined_call_operand.hbm [shape: f32[32,512], index: 1, kind: input, shape index: {}]   ;;  %s578_s2 = inlined_call_operand.vmem [shape: f32[1,512], index: 2, kind: input, shape index: {}]   ;;  %s579_s3 = inlined_call_operand.hbm [shape: f32[64,512], index: 3, kind: output, shape index: {}]  }
   0x1   :  { %9 = vsyncpa [#allocation4], 0  ;;  %s440_s12 = smov [#allocation2]  }
   0x2   :  { %s17_s13 = sshll.u32 %s440_s12, 4  ;;  %s18_s13 = int_to_ptr.vmem [resolvable:$true] %s17_s13 }
   0x3   :  { %s404_s14 = scalar_lea.vmem %s18_s13, 2048  ;;  %p409_p1 = scmp.lt.s32.totalorder %s18_s13, %s18_s13 }
   0x4   :  { %p405_p0 = scmp.ne.s32.totalorder %s18_s13, %s404_s14  ;;  %p410_p2 = scmp.lt.s32.totalorder %s404_s14, %s404_s14 }
   0x6   :  { %p411_p3 = por %p410_p2, %p409_p1 }
   0x8   :  { %p412_p4 = pnand %p411_p3, %p405_p0 }
   0xa   :  { %415 = shalt.err (!%p412_p4)
}
   0xb   :  { %s441_s15 = smov 512   ;;  %s442_s16 = smov 32  }
   0xc   :  { %23 = dma.hbm_to_vmem [thread:$0]  %s577_s1, 2048, %s18_s13, [#allocation3], %s441_s15, %s441_s15, %s442_s16  }
   0xd   :  { %436 = dma.done.wait [#allocation3], 2048  }
   0xe   :  { %437 = vsyncadd [#allocation3], 4294965248  ;;  %v443_v0 = vmov 0.0   ;;  %v50_v1 = vld [vmem:[#allocation2 + $0x68] sm:$0xff]  ;;  %v52_v2 = vld [vmem:[#allocation2 + $0x78] sm:$0xff]  ;;  %vm75_vm0 = vcmask 261120   ;;  %v55_v25 = vlaneseq }
   0xf   :  { %164 = vmatprep.mubr.f32.mxu0 %v443_v0  ;;  %277 = vmatprep.mubr.f32.mxu1 %v443_v0  ;;  %v49_v3 = vld [vmem:[#allocation2 + $0x60] sm:$0xff]  ;;  %v51_v4 = vld [vmem:[#allocation2 + $0x70] sm:$0xff]  ;;  %v46_v5 = vld [vmem:[#allocation2 + $0x48] sm:$0xff] }
  0x10   :  { %124 = vmatprep.subr.mxu0 %v50_v1  ;;  %237 = vmatprep.subr.mxu1 %v52_v2  ;;  %v48_v6 = vld [vmem:[#allocation2 + $0x58] sm:$0xff]  ;;  %v45_v7 = vld [vmem:[#allocation2 + $0x40] sm:$0xff]  ;;  %v47_v8 = vld [vmem:[#allocation2 + $0x50] sm:$0xff]  ;;  %v56_v26 = vshrl.u32 %v55_v25, 7 }
  0x11   :  { %125 = vmatpush1.msra.mxu0 %v49_v3  ;;  %238 = vmatpush1.msra.mxu1 %v51_v4  ;;  %v42_v9 = vld [vmem:[#allocation2 + $0x28] sm:$0xff]  ;;  %v44_v10 = vld [vmem:[#allocation2 + $0x38] sm:$0xff]  ;;  %v41_v11 = vld [vmem:[#allocation2 + $0x20] sm:$0xff] }
  0x12   :  { %126 = vmatprep.subr.mxu0 %v46_v5  ;;  %239 = vmatprep.subr.mxu1 %v48_v6  ;;  %v43_v12 = vld [vmem:[#allocation2 + $0x30] sm:$0xff]  ;;  %v38_v13 = vld [vmem:[#allocation2 + $0x8] sm:$0xff]  ;;  %v40_v14 = vld [vmem:[#allocation2 + $0x18] sm:$0xff]  ;;  %v57_v27 = vsub.s32 0, %v56_v26  ;;  %v65_v28 = vsub.s32 2, %v56_v26  ;;  %v61_v30 = vsub.s32 1, %v56_v26 }
  0x13   :  { %127 = vmatpush1.msra.mxu0 %v45_v7  ;;  %240 = vmatpush1.msra.mxu1 %v47_v8  ;;  %v37_v15 = vld [vmem:[#allocation2] sm:$0xff]  ;;  %v39_v16 = vld [vmem:[#allocation2 + $0x10] sm:$0xff]  ;;  %v30_v18 = vld [vmem:[%s576_s0 + $0x8] sm:$0xff]  ;;  %v69_v31 = vsub.s32 3, %v56_v26 }
  0x14   :  { %128 = vmatprep.subr.mxu0 %v42_v9  ;;  %241 = vmatprep.subr.mxu1 %v44_v10  ;;  %v29_v17 = vld [vmem:[%s576_s0] sm:$0xff]  ;;  %v31_v19 = vld [vmem:[%s576_s0 + $0x10] sm:$0xff]  ;;  %v32_v20 = vld [vmem:[%s576_s0 + $0x18] sm:$0xff] }
  0x15   :  { %129 = vmatpush1.msra.mxu0 %v41_v11  ;;  %242 = vmatpush1.msra.mxu1 %v43_v12  ;;  %v33_v21 = vld [vmem:[%s576_s0 + $0x20] sm:$0xff]  ;;  %v34_v22 = vld [vmem:[%s576_s0 + $0x28] sm:$0xff]  ;;  %v35_v23 = vld [vmem:[%s576_s0 + $0x30] sm:$0xff] }
  0x16   :  { %130 = vmatprep.subr.mxu0 %v38_v13  ;;  %243 = vmatprep.subr.mxu1 %v40_v14  ;;  %v36_v24 = vld [vmem:[%s576_s0 + $0x38] sm:$0xff]  ;;  %v53_v29 = vld [vmem:[%s578_s2] sm:$0xf]  ;;  %s444_s0 = smov [#allocation5]  }
  0x17   :  { %131 = vmatpush1.msra.mxu0 %v37_v15  ;;  %244 = vmatpush1.msra.mxu1 %v39_v16  ;;  %v530_v32 = vrot.slane %v53_v29, %v57_v27  ;;  %v532_v33 = vrot.slane %v53_v29, %v65_v28  ;;  %v534_v34 = vrot.slane %v53_v29, %v61_v30  ;;  %s363_s2 = sshll.u32 %s444_s0, 4  ;;  %s364_s2 = int_to_ptr.vmem [resolvable:$true] %s363_s2 }
  0x18   :  { %375 = vmatmul.mubr.msk.f32.vlgmr.msra.gmra.mxu0 %vm75_vm0, %v29_v17  ;;  %383 = vmatmul.mubr.msk.f32.vlgmr.msra.gmra.mxu1 %vm75_vm0, %v29_v17  ;;  %v536_v35 = vrot.slane %v53_v29, %v69_v31  ;;  %s416_s9 = scalar_lea.vmem %s364_s2, 4096  ;;  %p421_p6 = scmp.lt.s32.totalorder %s364_s2, %s364_s2 }
  0x19   :  { %170 = vmatprep.mubr.f32.mxu0 %v443_v0  ;;  %283 = vmatprep.mubr.f32.mxu1 %v443_v0  ;;  %p417_p5 = scmp.ne.s32.totalorder %s364_s2, %s416_s9  ;;  %p422_p7 = scmp.lt.s32.totalorder %s416_s9, %s416_s9 }
  0x1b   :  { %p423_p8 = por %p422_p7, %p421_p6 }
  0x1c   :  { %376 = vmatmul.mubr.msk.f32.gmra.mxu0 %vm75_vm0, %v30_v18  ;;  %384 = vmatmul.mubr.msk.f32.gmra.mxu1 %vm75_vm0, %v30_v18 }
  0x1d   :  { %176 = vmatprep.mubr.f32.mxu0 %v443_v0  ;;  %289 = vmatprep.mubr.f32.mxu1 %v443_v0  ;;  %p424_p9 = pnand %p423_p8, %p417_p5 }
  0x20   :  { %377 = vmatmul.mubr.msk.f32.gmra.mxu0 %vm75_vm0, %v31_v19  ;;  %385 = vmatmul.mubr.msk.f32.gmra.mxu1 %vm75_vm0, %v31_v19 }
  0x21   :  { %182 = vmatprep.mubr.f32.mxu0 %v443_v0  ;;  %295 = vmatprep.mubr.f32.mxu1 %v443_v0 }
  0x24   :  { %378 = vmatmul.mubr.msk.f32.gmra.mxu0 %vm75_vm0, %v32_v20  ;;  %386 = vmatmul.mubr.msk.f32.gmra.mxu1 %vm75_vm0, %v32_v20 }
  0x25   :  { %188 = vmatprep.mubr.f32.mxu0 %v443_v0  ;;  %301 = vmatprep.mubr.f32.mxu1 %v443_v0 }
  0x28   :  { %379 = vmatmul.mubr.msk.f32.gmra.mxu0 %vm75_vm0, %v33_v21  ;;  %387 = vmatmul.mubr.msk.f32.gmra.mxu1 %vm75_vm0, %v33_v21 }
  0x29   :  { %194 = vmatprep.mubr.f32.mxu0 %v443_v0  ;;  %307 = vmatprep.mubr.f32.mxu1 %v443_v0 }
  0x2c   :  { %380 = vmatmul.mubr.msk.f32.gmra.mxu0 %vm75_vm0, %v34_v22  ;;  %388 = vmatmul.mubr.msk.f32.gmra.mxu1 %vm75_vm0, %v34_v22 }
  0x2d   :  { %200 = vmatprep.mubr.f32.mxu0 %v443_v0  ;;  %313 = vmatprep.mubr.f32.mxu1 %v443_v0 }
  0x30   :  { %381 = vmatmul.mubr.msk.f32.gmra.mxu0 %vm75_vm0, %v35_v23  ;;  %389 = vmatmul.mubr.msk.f32.gmra.mxu1 %vm75_vm0, %v35_v23 }
  0x31   :  { %206 = vmatprep.mubr.f32.mxu0 %v443_v0  ;;  %319 = vmatprep.mubr.f32.mxu1 %v443_v0 }
  0x34   :  { %382 = vmatmul.mubr.msk.f32.gmra.mxu0 %vm75_vm0, %v36_v24  ;;  %390 = vmatmul.mubr.msk.f32.gmra.mxu1 %vm75_vm0, %v36_v24 }
  0xd8   :  { %v166_v36 = vpop.f32.mrf.mxu0  ;;  %v279_v37 = vpop.f32.mrf.mxu1 }
  0xd9   :  { %v167_v38 = vadd.f32 %v166_v36, %v530_v32  ;;  %v280_v39 = vadd.f32 %v279_v37, %v532_v33 }
  0xda   :  { %v168_v40 = vpop.f32.mrf.mxu0  ;;  %v281_v41 = vpop.f32.mrf.mxu1 }
  0xdb   :  { %326 = vst [vmem:[#allocation5] sm:$0xff] %v167_v38  ;;  %328 = vst [vmem:[#allocation5 + $0x10] sm:$0xff] %v280_v39  ;;  %v169_v42 = vadd.f32 %v168_v40, %v534_v34  ;;  %v282_v43 = vadd.f32 %v281_v41, %v536_v35 }
  0xdc   :  { %v172_v44 = vpop.f32.mrf.mxu0  ;;  %v285_v45 = vpop.f32.mrf.mxu1 }
  0xdd   :  { %327 = vst [vmem:[#allocation5 + $0x8] sm:$0xff] %v169_v42  ;;  %329 = vst [vmem:[#allocation5 + $0x18] sm:$0xff] %v282_v43  ;;  %v173_v46 = vadd.f32 %v172_v44, %v530_v32  ;;  %v286_v47 = vadd.f32 %v285_v45, %v532_v33 }
  0xde   :  { %v174_v48 = vpop.f32.mrf.mxu0  ;;  %v287_v49 = vpop.f32.mrf.mxu1 }
  0xdf   :  { %330 = vst [vmem:[#allocation5 + $0x20] sm:$0xff] %v173_v46  ;;  %332 = vst [vmem:[#allocation5 + $0x30] sm:$0xff] %v286_v47  ;;  %v175_v50 = vadd.f32 %v174_v48, %v534_v34  ;;  %v288_v51 = vadd.f32 %v287_v49, %v536_v35 }
  0xe0   :  { %v178_v52 = vpop.f32.mrf.mxu0  ;;  %v291_v53 = vpop.f32.mrf.mxu1 }
  0xe1   :  { %331 = vst [vmem:[#allocation5 + $0x28] sm:$0xff] %v175_v50  ;;  %333 = vst [vmem:[#allocation5 + $0x38] sm:$0xff] %v288_v51  ;;  %v179_v54 = vadd.f32 %v178_v52, %v530_v32  ;;  %v292_v55 = vadd.f32 %v291_v53, %v532_v33 }
  0xe2   :  { %v180_v56 = vpop.f32.mrf.mxu0  ;;  %v293_v57 = vpop.f32.mrf.mxu1 }
  0xe3   :  { %334 = vst [vmem:[#allocation5 + $0x40] sm:$0xff] %v179_v54  ;;  %336 = vst [vmem:[#allocation5 + $0x50] sm:$0xff] %v292_v55  ;;  %v181_v58 = vadd.f32 %v180_v56, %v534_v34  ;;  %v294_v59 = vadd.f32 %v293_v57, %v536_v35 }
  0xe4   :  { %v184_v60 = vpop.f32.mrf.mxu0  ;;  %v297_v61 = vpop.f32.mrf.mxu1 }
  0xe5   :  { %335 = vst [vmem:[#allocation5 + $0x48] sm:$0xff] %v181_v58  ;;  %337 = vst [vmem:[#allocation5 + $0x58] sm:$0xff] %v294_v59  ;;  %v185_v62 = vadd.f32 %v184_v60, %v530_v32  ;;  %v298_v63 = vadd.f32 %v297_v61, %v532_v33 }
  0xe6   :  { %v186_v0 = vpop.f32.mrf.mxu0  ;;  %v299_v1 = vpop.f32.mrf.mxu1 }
  0xe7   :  { %338 = vst [vmem:[#allocation5 + $0x60] sm:$0xff] %v185_v62  ;;  %340 = vst [vmem:[#allocation5 + $0x70] sm:$0xff] %v298_v63  ;;  %v187_v2 = vadd.f32 %v186_v0, %v534_v34  ;;  %v300_v3 = vadd.f32 %v299_v1, %v536_v35 }
  0xe8   :  { %v190_v4 = vpop.f32.mrf.mxu0  ;;  %v303_v5 = vpop.f32.mrf.mxu1 }
  0xe9   :  { %339 = vst [vmem:[#allocation5 + $0x68] sm:$0xff] %v187_v2  ;;  %341 = vst [vmem:[#allocation5 + $0x78] sm:$0xff] %v300_v3  ;;  %v191_v6 = vadd.f32 %v190_v4, %v530_v32  ;;  %v304_v7 = vadd.f32 %v303_v5, %v532_v33 }
  0xea   :  { %v192_v8 = vpop.f32.mrf.mxu0  ;;  %v305_v9 = vpop.f32.mrf.mxu1 }
  0xeb   :  { %342 = vst [vmem:[#allocation5 + $0x80] sm:$0xff] %v191_v6  ;;  %344 = vst [vmem:[#allocation5 + $0x90] sm:$0xff] %v304_v7  ;;  %v193_v10 = vadd.f32 %v192_v8, %v534_v34  ;;  %v306_v11 = vadd.f32 %v305_v9, %v536_v35 }
  0xec   :  { %v196_v12 = vpop.f32.mrf.mxu0  ;;  %v309_v13 = vpop.f32.mrf.mxu1 }
  0xed   :  { %343 = vst [vmem:[#allocation5 + $0x88] sm:$0xff] %v193_v10  ;;  %345 = vst [vmem:[#allocation5 + $0x98] sm:$0xff] %v306_v11  ;;  %v197_v14 = vadd.f32 %v196_v12, %v530_v32  ;;  %v310_v15 = vadd.f32 %v309_v13, %v532_v33 }
  0xee   :  { %v198_v16 = vpop.f32.mrf.mxu0  ;;  %v311_v17 = vpop.f32.mrf.mxu1 }
  0xef   :  { %346 = vst [vmem:[#allocation5 + $0xa0] sm:$0xff] %v197_v14  ;;  %348 = vst [vmem:[#allocation5 + $0xb0] sm:$0xff] %v310_v15  ;;  %v199_v18 = vadd.f32 %v198_v16, %v534_v34  ;;  %v312_v19 = vadd.f32 %v311_v17, %v536_v35 }
  0xf0   :  { %v202_v20 = vpop.f32.mrf.mxu0  ;;  %v315_v21 = vpop.f32.mrf.mxu1 }
  0xf1   :  { %347 = vst [vmem:[#allocation5 + $0xa8] sm:$0xff] %v199_v18  ;;  %349 = vst [vmem:[#allocation5 + $0xb8] sm:$0xff] %v312_v19  ;;  %v203_v22 = vadd.f32 %v202_v20, %v530_v32  ;;  %v316_v23 = vadd.f32 %v315_v21, %v532_v33 }
  0xf2   :  { %v204_v24 = vpop.f32.mrf.mxu0  ;;  %v317_v25 = vpop.f32.mrf.mxu1 }
  0xf3   :  { %350 = vst [vmem:[#allocation5 + $0xc0] sm:$0xff] %v203_v22  ;;  %352 = vst [vmem:[#allocation5 + $0xd0] sm:$0xff] %v316_v23  ;;  %v205_v26 = vadd.f32 %v204_v24, %v534_v34  ;;  %v318_v27 = vadd.f32 %v317_v25, %v536_v35 }
  0xf4   :  { %v208_v28 = vpop.f32.mrf.mxu0  ;;  %v321_v29 = vpop.f32.mrf.mxu1 }
  0xf5   :  { %351 = vst [vmem:[#allocation5 + $0xc8] sm:$0xff] %v205_v26  ;;  %353 = vst [vmem:[#allocation5 + $0xd8] sm:$0xff] %v318_v27  ;;  %v209_v30 = vadd.f32 %v208_v28, %v530_v32  ;;  %v322_v31 = vadd.f32 %v321_v29, %v532_v33 }
  0xf6   :  { %v210_v36 = vpop.f32.mrf.mxu0  ;;  %v323_v37 = vpop.f32.mrf.mxu1 }
  0xf7   :  { %354 = vst [vmem:[#allocation5 + $0xe0] sm:$0xff] %v209_v30  ;;  %356 = vst [vmem:[#allocation5 + $0xf0] sm:$0xff] %v322_v31  ;;  %v211_v38 = vadd.f32 %v210_v36, %v534_v34  ;;  %v324_v39 = vadd.f32 %v323_v37, %v536_v35 }
  0xf9   :  { %355 = vst [vmem:[#allocation5 + $0xe8] sm:$0xff] %v211_v38  ;;  %357 = vst [vmem:[#allocation5 + $0xf8] sm:$0xff] %v324_v39 }
  0xfa   :  { %427 = shalt.err (!%p424_p9)
}
  0xfb   :  { %369 = dma.vmem_to_hbm [thread:$0]  %s364_s2, 4096, %s579_s3, [#allocation4], %s441_s15, %s441_s15, %s442_s16  }
  0xfc   :  { %438 = dma.done.wait [#allocation4], 4096  }
  0xfd   :  { %439 = vsyncadd [#allocation4], 4294963200 }
  0xfe   :  { %373 = vsyncpa [#allocation3], 1 }
  0xff   :  { %374 = vsyncpa [#allocation4], 1 }

</bundles_post_ra>
